<compile_context>
chip_gen: v7x
topology: tpu7x:2x2x1
jax: 0.10.0
libtpu: 0.0.40
codegen_flags: <defaults>
</compile_context>

<pallas_src>
import functools

import jax
import jax.numpy as jnp
from jax.experimental import pallas as pl
from jax.experimental.pallas import tpu as pltpu

N2 = 20
LAYERS = [2 * N2, 40, 1]  # [40, 40, 1]


def _round_up(n, m):
    return ((n + m - 1) // m) * m


def dnn_kernel(x_ref, w1_ref, b1_ref, w2_ref, b2_ref, o_ref):
    # x_ref : (40, TILE_B)  features x batch-tile (batch on lanes)
    # w1_ref: (40, 40)      layer-1 weight, PyTorch (out, in) layout
    # b1_ref: (40, 1)       layer-1 bias (broadcast over lanes/batch)
    # w2_ref: (40, 1)       layer-2 weight as a column
    # b2_ref: (1, 1)        layer-2 bias
    # o_ref : (1, TILE_B)   lane-dense output
    h = jnp.tanh(
        jnp.dot(w1_ref[...], x_ref[...], preferred_element_type=jnp.float32)
        + b1_ref[...]
    )
    # 40 -> 1 layer on VPU (multiply) + XLU (sublane reduce); keeps MXU free.
    o_ref[...] = jnp.sum(h * w2_ref[...], axis=0, keepdims=True) + b2_ref[...]


@functools.partial(jax.jit, static_argnames=("tile_b",))
def dnn_forward(x, w1, b1, w2, b2, *, tile_b=1024):
    """x: (B, 40) f32 -> (B, 1) f32."""
    B = x.shape[0]
    d_in, d_hid, d_out = LAYERS

    # Batch tile: lane-aligned (multiple of 128), capped by the (padded) batch.
    tile_b = min(tile_b, _round_up(B, 128))
    padded_b = _round_up(B, tile_b)

    # Transpose so batch is the lane axis; zero-pad the ragged batch tail.
    x_t = jnp.zeros((d_in, padded_b), jnp.float32).at[:, :B].set(x.T)

    grid = (padded_b // tile_b,)

    flops = 2 * padded_b * d_in * (d_hid + d_out)
    bytes_accessed = 4 * (
        padded_b * d_in + padded_b * d_out                       # x, out
        + d_hid * d_in + d_hid + d_hid * d_out + d_out           # weights/biases
    )

    out_t = pl.pallas_call(
        dnn_kernel,
        out_shape=jax.ShapeDtypeStruct((d_out, padded_b), jnp.float32),
        grid=grid,
        in_specs=[
            pl.BlockSpec((d_in, tile_b), lambda i: (0, i)),   # x tile (pipelined)
            pl.BlockSpec((d_hid, d_in), lambda i: (0, 0)),    # w1 (VMEM-resident)
            pl.BlockSpec((d_hid, 1), lambda i: (0, 0)),       # b1
            pl.BlockSpec((d_hid, 1), lambda i: (0, 0)),       # w2
            pl.BlockSpec((1, 1), lambda i: (0, 0)),           # b2
        ],
        out_specs=pl.BlockSpec((d_out, tile_b), lambda i: (0, i)),
        compiler_params=pltpu.CompilerParams(
            dimension_semantics=("parallel",)),
        cost_estimate=pl.CostEstimate(
            flops=flops,
            transcendentals=padded_b * d_hid,
            bytes_accessed=bytes_accessed),
    )(x_t, w1, b1, w2, b2)

    # Back to the PyTorch-facing (B, 1) layout.
    return out_t[:, :B].T


def init_params(key):
    """Xavier-uniform weights (PyTorch (out, in) layout), PyTorch-default biases."""
    k1, k2, k3, k4 = jax.random.split(key, 4)
    d_in, d_hid, d_out = LAYERS

    def xavier(k, shape, fan_in, fan_out):
        bound = (6.0 / (fan_in + fan_out)) ** 0.5
        return jax.random.uniform(k, shape, jnp.float32, -bound, bound)

    def bias(k, shape, fan_in):
        bound = 1.0 / (fan_in ** 0.5)
        return jax.random.uniform(k, shape, jnp.float32, -bound, bound)

    w1 = xavier(k1, (d_hid, d_in), d_in, d_hid)   # (out, in)
    b1 = bias(k2, (d_hid, 1), d_in)               # column: broadcasts over batch
    w2 = xavier(k3, (d_hid, d_out), d_hid, d_out)  # column form of (1, 40) weight
    b2 = bias(k4, (d_out, 1), d_hid)
    return w1, b1, w2, b2


def dnn_reference(x, w1, b1, w2, b2):
    """Pure-JAX reference in the standard (B, features) layout."""
    h = jnp.tanh(x @ w1.T + b1[:, 0])
    return h @ w2 + b2[:, 0]


if __name__ == "__main__":
    key = jax.random.PRNGKey(0)
    kx, kp = jax.random.split(key)

    # Small batch of collocation points after the 2*N2-dim feature lift.
    # B=300 deliberately exercises both the batch grid (3 steps at tile 128)
    # and the ragged-tail padding path.
    B = 300
    x = jax.random.normal(kx, (B, LAYERS[0]), jnp.float32)
    w1, b1, w2, b2 = init_params(kp)

    out = dnn_forward(x, w1, b1, w2, b2, tile_b=128)
    out = jax.block_until_ready(out)

    ref = dnn_reference(x, w1, b1, w2, b2)
    assert out.shape == (B, 1), out.shape
    assert jnp.allclose(out, ref, atol=1e-5, rtol=1e-5), "mismatch vs reference"

    print("KERNEL_OK")
</pallas_src>

<mosaic_0001>
module attributes {stable_mosaic.version = 11 : i64} {
  func.func @dnn_kernel(%arg0: i32, %arg1: memref<40x128xf32, #tpu.memory_space<vmem>>, %arg2: memref<40x40xf32, #tpu.memory_space<vmem>>, %arg3: memref<40x1xf32, #tpu.memory_space<vmem>>, %arg4: memref<40x1xf32, #tpu.memory_space<vmem>>, %arg5: memref<1x1xf32, #tpu.memory_space<vmem>>, %arg6: memref<1x128xf32, #tpu.memory_space<vmem>>) attributes {dimension_semantics = [#tpu.dimension_semantics<parallel>], iteration_bounds = array<i64: 3>, scalar_prefetch = 0 : i64, scratch_operands = 0 : i64, tpu.core_type = #tpu.core_type<tc>, window_params = [{transform_indices = @transform_0, window_bounds = array<i64: 40, 128>}, {pipeline_mode = #tpu.pipeline_mode<synchronous>, transform_indices = @transform_1, window_bounds = array<i64: 40, 40>}, {pipeline_mode = #tpu.pipeline_mode<synchronous>, transform_indices = @transform_2, window_bounds = array<i64: 40, 1>}, {pipeline_mode = #tpu.pipeline_mode<synchronous>, transform_indices = @transform_3, window_bounds = array<i64: 40, 1>}, {pipeline_mode = #tpu.pipeline_mode<synchronous>, transform_indices = @transform_4, window_bounds = array<i64: 1, 1>}, {transform_indices = @transform_5, window_bounds = array<i64: 1, 128>}]} {
    %c0 = arith.constant 0 : index
    %c0_0 = arith.constant 0 : index
    %0 = vector.load %arg2[%c0, %c0_0] : memref<40x40xf32, #tpu.memory_space<vmem>>, vector<40x40xf32>
    %c0_1 = arith.constant 0 : index
    %c0_2 = arith.constant 0 : index
    %1 = vector.load %arg1[%c0_1, %c0_2] : memref<40x128xf32, #tpu.memory_space<vmem>>, vector<40x128xf32>
    %cst = arith.constant dense<0.000000e+00> : vector<40x128xf32>
    %2 = tpu.matmul %0, %1, %cst {dimension_numbers = #tpu.dot_dimension_numbers<[1], [0], [0], [1], [0, 0, 1, 1], [], []>} : vector<40x40xf32>, vector<40x128xf32>, vector<40x128xf32> -> vector<40x128xf32>
    %c0_3 = arith.constant 0 : index
    %c0_4 = arith.constant 0 : index
    %3 = vector.load %arg3[%c0_3, %c0_4] : memref<40x1xf32, #tpu.memory_space<vmem>>, vector<40x1xf32>
    %4 = vector.broadcast %3 : vector<40x1xf32> to vector<40x128xf32>
    %5 = arith.addf %2, %4 : vector<40x128xf32>
    %6 = math.tanh %5 : vector<40x128xf32>
    %c0_5 = arith.constant 0 : index
    %c0_6 = arith.constant 0 : index
    %7 = vector.load %arg4[%c0_5, %c0_6] : memref<40x1xf32, #tpu.memory_space<vmem>>, vector<40x1xf32>
    %8 = vector.broadcast %7 : vector<40x1xf32> to vector<40x128xf32>
    %9 = arith.mulf %6, %8 : vector<40x128xf32>
    %cst_7 = arith.constant dense<0.000000e+00> : vector<128xf32>
    %10 = vector.multi_reduction <add>, %9, %cst_7 [0] : vector<40x128xf32> to vector<128xf32>
    %11 = vector.shape_cast %10 : vector<128xf32> to vector<1x128xf32>
    %c0_8 = arith.constant 0 : index
    %c0_9 = arith.constant 0 : index
    %12 = vector.load %arg5[%c0_8, %c0_9] : memref<1x1xf32, #tpu.memory_space<vmem>>, vector<1x1xf32>
    %13 = vector.broadcast %12 : vector<1x1xf32> to vector<1x128xf32>
    %14 = arith.addf %11, %13 : vector<1x128xf32>
    %c0_10 = arith.constant 0 : index
    %c0_11 = arith.constant 0 : index
    %15 = vector.load %arg6[%c0_10, %c0_11] : memref<1x128xf32, #tpu.memory_space<vmem>>, vector<1x128xf32>
    tpu.vector_store %arg6[%c0_10, %c0_11], %14 {strides = array<i32>} : memref<1x128xf32, #tpu.memory_space<vmem>>, vector<1x128xf32>,
    return
  }
  func.func @transform_0(%arg0: i32) -> (i32, i32) {
    %c0_i32 = arith.constant 0 : i32
    %c0_i32_0 = arith.constant 0 : i32
    return %c0_i32, %arg0 : i32, i32
  }
  func.func @transform_1(%arg0: i32) -> (i32, i32) {
    %c0_i32 = arith.constant 0 : i32
    %c0_i32_0 = arith.constant 0 : i32
    %c0_i32_1 = arith.constant 0 : i32
    return %c0_i32, %c0_i32_0 : i32, i32
  }
  func.func @transform_2(%arg0: i32) -> (i32, i32) {
    %c0_i32 = arith.constant 0 : i32
    %c0_i32_0 = arith.constant 0 : i32
    %c0_i32_1 = arith.constant 0 : i32
    return %c0_i32, %c0_i32_0 : i32, i32
  }
  func.func @transform_3(%arg0: i32) -> (i32, i32) {
    %c0_i32 = arith.constant 0 : i32
    %c0_i32_0 = arith.constant 0 : i32
    %c0_i32_1 = arith.constant 0 : i32
    return %c0_i32, %c0_i32_0 : i32, i32
  }
  func.func @transform_4(%arg0: i32) -> (i32, i32) {
    %c0_i32 = arith.constant 0 : i32
    %c0_i32_0 = arith.constant 0 : i32
    %c0_i32_1 = arith.constant 0 : i32
    return %c0_i32, %c0_i32_0 : i32, i32
  }
  func.func @transform_5(%arg0: i32) -> (i32, i32) {
    %c0_i32 = arith.constant 0 : i32
    %c0_i32_0 = arith.constant 0 : i32
    return %c0_i32, %arg0 : i32, i32
  }
}

</mosaic_0001>

<bundles_post_ra>
// kernel: dnn_forward.1
= control target key start
LH: loop header
LB: loop body
LE: loop exit
PB: predicated region body
PF: predicated region fallthrough
CT: control target
= control target key end

     0   :  { %s806_s0 = inlined_call_operand.vmem [shape: f32[40,384], index: 0, kind: input, shape index: {}]   ;;  %s807_s1 = inlined_call_operand.vmem [shape: f32[40,40], index: 1, kind: input, shape index: {}]   ;;  %s808_s2 = inlined_call_operand.vmem [shape: f32[40,1], index: 2, kind: input, shape index: {}]   ;;  %s809_s3 = inlined_call_operand.vmem [shape: f32[40,1], index: 3, kind: input, shape index: {}]   ;;  %s810_s4 = inlined_call_operand.<no memory space> [shape: f32[1,1], index: 4, kind: input, shape index: {}]   ;;  %s811_s5 = inlined_call_operand.vmem [shape: f32[1,384], index: 5, kind: output, shape index: {}]  }
   0x1   :  { %v10_v0 = vstv %s810_s4 }
   0x2   :  { %11 = vst [vmem:[#allocation2] sm:$0x1] %v10_v0 }
   0x3   :  { %s697_s20 = smov 0   ;;  %s699_s21 = smov 0  }
   0x4   :  { %s701_s22 = smov 0  }
   0x5 LB: > { %s534_s4 = sadd.s32 4294967295, %s658_s22   ;;  %s714_s23 = sadd.s32 1, %s658_s22   ;;  %s658_s22 = sphi %s701_s22, %s814_s22   ;;  %s654_s21 = sphi %s699_s21, %s813_s21   ;;  %s650_s20 = sphi %s697_s20, %s812_s20  }
   0x6   : > { %s21_s24 = ssub.s32 %s658_s22, %s714_s23  ;;  %s24_s25 = sadd.s32 1, %s654_s21 }
   0x7   : > { %p22_p0 = scmp.eq.s32.totalorder %s21_s24, 0  ;;  %p31_p1 = scmp.ne.s32.totalorder %s654_s21, %s650_s20 }
   0x8   : > { %p32_p2 = scmp.eq.s32.totalorder %s658_s22, 0  ;;  %p537_p4 = scmp.ge.s32.totalorder %s658_s22, 3 }
   0x9   : > { %s723_s26 = scalar_select %p22_p0, %s654_s21, %s24_s25  }
   0xa   : > { %p33_p3 = por %p32_p2, %p31_p1  ;;  %179 = sbr.rel (%p537_p4) target bundleno = 24 (0x18), region = 32 }
  0x11   : > { %182 = sbr.rel (!%p33_p3) target bundleno = 24 (0x18), region = 36  ;;  %s184_s27 = sand.u32 (%p33_p3), 1, %s654_s21  }
  0x12   : > { %s538_s28 = sshll.u32 (%p33_p3), %s658_s22, 3  ;;  %s594_s29 = smul.u32 (%p33_p3), 40, %s184_s27 }
  0x13   : > { %s188_s7 = scalar_lea.vmem (%p33_p3), %s806_s0, %s538_s28 }
  0x14   : > { %v224_v1 = vld [vmem:[%s188_s7] sm:$0xff] (%p33_p3)  ;;  %v226_v2 = vld [vmem:[%s188_s7 + $0x18] sm:$0xff] (%p33_p3)  ;;  %v228_v3 = vld [vmem:[%s188_s7 + $0x30] sm:$0xff] (%p33_p3)  ;;  %s186_s8 = scalar_lea.vmem (%p33_p3), [#allocation3], %s594_s29 }
  0x15   : > { %v230_v4 = vld [vmem:[%s188_s7 + $0x48] sm:$0xff] (%p33_p3)  ;;  %v232_v5 = vld [vmem:[%s188_s7 + $0x60] sm:$0xff] (%p33_p3)  ;;  %225 = vst [vmem:[%s186_s8] sm:$0xff] (%p33_p3), %v224_v1  ;;  %227 = vst [vmem:[%s186_s8 + $0x8] sm:$0xff] (%p33_p3), %v226_v2 }
  0x16   : > { %229 = vst [vmem:[%s186_s8 + $0x10] sm:$0xff] (%p33_p3), %v228_v3  ;;  %231 = vst [vmem:[%s186_s8 + $0x18] sm:$0xff] (%p33_p3), %v230_v4 }
  0x17   : > { %233 = vst [vmem:[%s186_s8 + $0x20] sm:$0xff] (%p33_p3), %v232_v5 }
  0x18 PF: > { %p539_p5 = scmp.ge.s32.totalorder %s658_s22, 1  ;;  %p238_p6 = scmp.lt.s32.totalorder %s658_s22, 4 }
  0x1a   : > { %p239_p7 = pnand %p539_p5, %p238_p6 }
  0x1b   : > { %s245_s9 = sand.u32 (!%p239_p7), 1, %s650_s20   ;;  %v660_v6 = vmov (!%p239_p7), 0.0|0.0   ;;  %vm661_vm0 = vmmov (!%p239_p7), 0   ;;  %v662_v7 = vmov (!%p239_p7), 0.0   ;;  %v283_v8 = vld [vmem:[%s808_s2] sm:$0xff] (!%p239_p7)  ;;  %v663_v9 = vmov (!%p239_p7), 0  }
  0x1c   : > { %242 = sbr.rel (%p239_p7) target bundleno = 300 (0x12c), region = 74  ;;  %582 = vmatprep.subr.bf16.mxu0 (!%p239_p7), %v660_v6  ;;  %588 = vmatprep.subr.bf16.mxu1 (!%p239_p7), %v660_v6  ;;  %v285_v10 = vld [vmem:[%s808_s2 + $0x10] sm:$0xff] (!%p239_p7)  ;;  %v284_v16 = vld [vmem:[%s808_s2 + $0x8] sm:$0xff] (!%p239_p7)  ;;  %v286_v17 = vld [vmem:[%s808_s2 + $0x18] sm:$0xff] (!%p239_p7)  ;;  %vm313_vm1 = vcmask (!%p239_p7), 326656   ;;  %p270_p8 = scmp.lt.s32.totalorder (!%p239_p7), %s534_s4, 2 }
  0x1d   : > { %s595_s10 = smul.u32 (!%p239_p7), 40, %s245_s9  ;;  %567 = vmatprep.mubr.msk.f32.mxu0 (!%p239_p7), %vm661_vm0, %v662_v7  ;;  %576 = vmatprep.mubr.msk.f32.mxu1 (!%p239_p7), %vm661_vm0, %v662_v7  ;;  %v287_v19 = vld [vmem:[%s808_s2 + $0x20] sm:$0xff] (!%p239_p7)  ;;  %v276_v23 = vld [vmem:[%s807_s1 + $0x18] sm:$0xff] (!%p239_p7)  ;;  %v425_v24 = vld [vmem:[%s809_s3 + $0x8] sm:$0xff] (!%p239_p7) }
  0x1e   : > { %624 = vset.pattern.permute.xlu0 (!%p239_p7), %v663_v9  ;;  %625 = vset.pattern.permute.xlu1 (!%p239_p7), %v663_v9  ;;  %v424_v20 = vld [vmem:[%s809_s3] sm:$0xff] (!%p239_p7)  ;;  %v426_v25 = vld [vmem:[%s809_s3 + $0x10] sm:$0xff] (!%p239_p7)  ;;  %v274_v26 = vld [vmem:[%s807_s1 + $0x8] sm:$0xff] (!%p239_p7) }
  0x1f   : > { %s247_s15 = scalar_lea.vmem (!%p239_p7), [#allocation3], %s595_s10  ;;  %290 = vperm.xlu0 (!%p239_p7), %624, %v283_v8   ;;  %300 = vperm.xlu1 (!%p239_p7), %625, %v285_v10   ;;  %v273_v22 = vld [vmem:[%s807_s1] sm:$0xff] (!%p239_p7)  ;;  %v427_v28 = vld [vmem:[%s809_s3 + $0x18] sm:$0xff] (!%p239_p7)  ;;  %v275_v30 = vld [vmem:[%s807_s1 + $0x10] sm:$0xff] (!%p239_p7) }
  0x20   : > { %v278_v11 = vld [vmem:[%s247_s15] sm:$0xff] (!%p239_p7)  ;;  %v279_v12 = vld [vmem:[%s247_s15 + $0x8] sm:$0xff] (!%p239_p7)  ;;  %v280_v13 = vld [vmem:[%s247_s15 + $0x10] sm:$0xff] (!%p239_p7) }
  0x21   : > { %v583_v14 = vpack.c.bf16 (!%p239_p7), %v279_v12, %v278_v11  ;;  %v281_v15 = vld [vmem:[%s247_s15 + $0x18] sm:$0xff] (!%p239_p7)  ;;  %v282_v21 = vld [vmem:[%s247_s15 + $0x20] sm:$0xff] (!%p239_p7) }
  0x22   : > { %v586_v18 = vpack.c.bf16 (!%p239_p7), %v281_v15, %v280_v13  ;;  %v277_v27 = vld [vmem:[%s807_s1 + $0x20] sm:$0xff] (!%p239_p7) }
  0x23   : > { %584 = vmatpush3.bf16.msra.mxu0 %v583_v14  ;;  %591 = vmatpush3.bf16.msra.mxu1 %v583_v14  ;;  %v428_v29 = vld [vmem:[%s809_s3 + $0x20] sm:$0xff]  ;;  %s816_s4 = smov (!%p270_p8, %s534_s4), 2 }
  0x24   : > { %585 = vmatprep.subr.bf16.mxu0 %v660_v6  ;;  %589 = vmatprep.subr.bf16.mxu1 %v660_v6  ;;  %v469_v31 = vld [vmem:[#allocation2] sm:$0x1]  ;;  %v475_v6 = vlaneseq  ;;  %s272_s27 = scalar_lea.vmem %s811_s5, %s816_s4 }
  0x25   : > { %295 = vperm.xlu0 %624, %v284_v16   ;;  %305 = vperm.xlu1 %625, %v286_v17  }
  0x26   : > { %v476_v9 = vshrl.u32 %v475_v6, 7 }
  0x27   : > { %587 = vmatpush3.bf16.msra.mxu0 %v586_v18  ;;  %592 = vmatpush3.bf16.msra.mxu1 %v586_v18 }
  0x28   : > { %565 = vmatprep.subr.mxu0 %v662_v7  ;;  %590 = vmatprep.subr.mxu1 %v662_v7  ;;  %v477_v12 = vsub.s32 0, %v476_v9 }
  0x29   : > { %310 = vperm.xlu0 %624, %v287_v19   ;;  %431 = vperm.xlu1 %625, %v424_v20  }
  0x2b   : > { %566 = vmatpush3.msra.mxu0 %v282_v21  ;;  %593 = vmatpush3.msra.mxu1 %v282_v21 }
  0x2c   : > { %568 = vmatmul.mubr.msk.f32.vlgmr.msra.gmra.mrb[0].mxu0 %vm313_vm1, %v273_v22  ;;  %577 = vmatmul.mubr.msk.f32.vlgmr.msra.gmra.mrb[0].mxu1 %vm313_vm1, %v276_v23 }
  0x2d   : > { %570 = vmatprep.mubr.msk.f32.mxu0 %vm661_vm0, %v662_v7  ;;  %579 = vmatprep.mubr.msk.f32.mxu1 %vm661_vm0, %v662_v7 }
  0x2e   : > { %436 = vperm.xlu0 %624, %v425_v24   ;;  %441 = vperm.xlu1 %625, %v426_v25  }
  0x30   : > { %571 = vmatmul.mubr.msk.f32.gmra.mrb[2].mxu0 %vm313_vm1, %v274_v26  ;;  %580 = vmatmul.mubr.msk.f32.gmra.mrb[2].mxu1 %vm313_vm1, %v277_v27 }
  0x31   : > { %573 = vmatprep.mubr.msk.f32.mxu0 %vm661_vm0, %v662_v7 }
  0x32   : > { %446 = vperm.xlu0 %624, %v427_v28   ;;  %451 = vperm.xlu1 %625, %v428_v29  }
  0x34   : > { %574 = vmatmul.mubr.msk.f32.gmra.mrb[4].mxu0 %vm313_vm1, %v275_v30 }
  0x36   : > { %472 = vperm.xlu0 %624, %v469_v31  }
  0x9e   : > { %v291_v32 = vpop.permute.xlu0 %290  ;;  %v301_v33 = vpop.permute.xlu1 %300 }
  0xa4   : > { %v296_v39 = vpop.permute.xlu0 %295  ;;  %v306_v40 = vpop.permute.xlu1 %305 }
  0xa8   : > { %v311_v47 = vpop.permute.xlu0 %310  ;;  %v432_v52 = vpop.permute.xlu1 %431 }
  0xad   : > { %v437_v55 = vpop.permute.xlu0 %436  ;;  %v442_v58 = vpop.permute.xlu1 %441 }
  0xb1   : > { %v447_v0 = vpop.permute.xlu0 %446  ;;  %v452_v3 = vpop.permute.xlu1 %451 }
  0xb5   : > { %v473_v14 = vpop.permute.xlu0 %472 }
  0xb6   : > { %v478_v16 = vrot.slane %v473_v14, %v477_v12 }
  0xff   : > { %v395_v34 = vpop.f32.mrb[0].mxu0  ;;  %v410_v35 = vpop.f32.mrb[0].mxu1 }
 0x100   : > { %v396_v36 = vadd.f32 %v395_v34, %v291_v32  ;;  %v569_v37 = vpop.f32.mrb[1].mxu0  ;;  %v578_v38 = vpop.f32.mrb[1].mxu1  ;;  %v411_v46 = vadd.f32 %v410_v35, %v306_v40 }
 0x102   : > { %626 = vtanh.f32 %v396_v36 }
 0x103   : > { %v400_v41 = vpop.f32.mrb[2].mxu0  ;;  %v415_v42 = vpop.f32.mrb[2].mxu1 }
 0x104   : > { %v401_v43 = vadd.f32 %v400_v41, %v296_v39  ;;  %v572_v44 = vpop.f32.mrb[3].mxu0  ;;  %v581_v45 = vpop.f32.mrb[3].mxu1  ;;  %v416_v49 = vadd.f32 %v415_v42, %v311_v47 }
 0x106   : > { %628 = vtanh.f32 %v401_v43 }
 0x107   : > { %v405_v48 = vpop.f32.mrb[4].mxu0  ;;  %630 = vtanh.f32 %v411_v46 }
 0x108   : > { %v406_v50 = vadd.f32 %v405_v48, %v301_v33  ;;  %v575_v51 = vpop.f32.mrb[5].mxu0 }
 0x10a   : > { %632 = vtanh.f32 %v406_v50 }
 0x10b   : > { %634 = vtanh.f32 %v416_v49 }
 0x10c   : > { %v627_v53 = vpop.eup %626 }
 0x10d   : > { %v454_v56 = vmul.f32 %v627_v53, %v432_v52 }
 0x110   : > { %v629_v54 = vpop.eup %628 }
 0x111   : > { %v455_v57 = vmul.f32 %v629_v54, %v437_v55  ;;  %v631_v59 = vpop.eup %630 }
 0x112   : > { %v457_v1 = vmul.f32 %v631_v59, %v447_v0 }
 0x113   : > { %v459_v60 = vadd.f32 %v455_v57, %v454_v56 }
 0x114   : > { %v633_v61 = vpop.eup %632 }
 0x115   : > { %v456_v62 = vmul.f32 %v633_v61, %v442_v58  ;;  %v635_v63 = vpop.eup %634 }
 0x116   : > { %v458_v4 = vmul.f32 %v635_v63, %v452_v3 }
 0x117   : > { %v460_v2 = vadd.f32 %v459_v60, %v456_v62 }
 0x119   : > { %v461_v5 = vadd.f32 %v460_v2, %v457_v1 }
 0x11b   : > { %v462_v7 = vadd.f32 %v461_v5, %v458_v4 }
 0x11d   : > { %v463_v8 = vrot.slane %v462_v7, 4 }
 0x11f   : > { %v464_v10 = vadd.f32 %v463_v8, %v462_v7 }
 0x121   : > { %v465_v11 = vrot.slane %v464_v10, 2 }
 0x123   : > { %v466_v13 = vadd.f32 %v465_v11, %v464_v10 }
 0x125   : > { %v467_v15 = vrot.slane %v466_v13, 1 }
 0x127   : > { %v468_v17 = vadd.f32 %v467_v15, %v466_v13 }
 0x129   : > { %v479_v18 = vadd.f32 %v478_v16, %v468_v17 }
 0x12b   : > { %480 = vst [vmem:[%s272_s27] sm:$0x1] %v479_v18 }
 0x12c PF: > { %p14_p9 = scmp.ge.s32.totalorder %s714_s23, 5   ;;  %s812_s20 = smov %s654_s21 }
 0x12d   : > { %s813_s21 = smov %s723_s26  ;;  %s814_s22 = smov %s714_s23 }
 0x12e   :  { %16 = sbr.rel (!%p14_p9) target bundleno = 5 (0x5), region = 113 }

</bundles_post_ra>
